<compile_context>
chip_gen: v6e
topology: v6e:2x2x1
jax: 0.10.0
libtpu: 0.0.40
codegen_flags: <defaults>
</compile_context>

<pallas_src>
import jax
import jax.numpy as jnp
from jax.experimental import pallas as pl
from jax.experimental.pallas import tpu as pltpu

NEG_SLOPE = 0.2               # nn.LeakyReLU(negative_slope=0.2)
LANE = 128
BF16_SUBLANE = 16             # bf16 minimum sublane tile
VMEM_BUDGET = 12 * 1024 * 1024   # tile-sizing budget: fits v5e 16MiB default scoped VMEM
VMEM_LIMIT = 32 * 1024 * 1024    # explicit scoped-VMEM limit (safe on v5e/v6e/v7x)


# ---------------------------------------------------------------------------
# Shared in-kernel GAT head math
# ---------------------------------------------------------------------------
def _attention_head(tgt, nbr, wn, wa_row):
    """One GAT attention head (both heads of the reference are identical).

    tgt    [TB, Dt]      bf16  target embeddings
    nbr    [N, TB, Dn]   bf16  neighbor embeddings, neighbor-major
    wn     [Dn, D2+1]    bf16  [P | P @ a_n^T]   (P = projection for this hop)
    wa_row [1, Dt]       bf16  a_t @ W           (target attention row)
    returns head [TB, D2] f32.
    """
    N, TB, Dn = nbr.shape
    D2 = wn.shape[1] - 1

    # target attention term: e_t = (tgt @ W^T) @ a_t^T == tgt @ (a_t @ W)^T
    e_t = jnp.sum(tgt.astype(jnp.float32) * wa_row.astype(jnp.float32),
                  axis=-1, keepdims=True)                                 # [TB, 1]

    # one flat MXU matmul: projection + neighbor attention column, f32 accumulate.
    # reshape merges the two leading (major) dims only -> layout-preserving.
    proj = jnp.dot(nbr.reshape(N * TB, Dn), wn,
                   preferred_element_type=jnp.float32)                    # [N*TB, D2+1]

    # statically unrolled over the (small) neighbor count: sublane-aligned slices,
    # softmax over neighbors becomes pure elementwise VPU/EUP work (no XLU reduce).
    ws, es = [], []
    for n in range(N):
        blk = proj[n * TB:(n + 1) * TB]
        ws.append(blk[:, :D2])                                            # W(nbr_n)  [TB, D2]
        e = blk[:, D2:] + e_t                                             # logit     [TB, 1]
        es.append(jnp.where(e >= 0.0, e, NEG_SLOPE * e))                  # LeakyReLU(0.2)

    m = es[0]
    for e in es[1:]:
        m = jnp.maximum(m, e)
    ps = [jnp.exp(e - m) for e in es]                                     # EUP
    denom = ps[0]
    for p in ps[1:]:
        denom = denom + p
    acc = ps[0] * ws[0]
    for p, w in zip(ps[1:], ws[1:]):
        acc = acc + p * w
    return acc * pl.reciprocal(denom, approx=True)                        # [TB, D2]


# ---------------------------------------------------------------------------
# Pallas kernels
# ---------------------------------------------------------------------------
def _gat_agg_kernel(tgt_ref, nbr_ref, wn_ref, wa_ref, out_ref):
    """multiHeadAttentionAggregator: heads share W/a -> store the single head once."""
    head = _attention_head(tgt_ref[...], nbr_ref[...], wn_ref[...], wa_ref[...])
    out_ref[...] = head.astype(out_ref.dtype)


def _gat_agg_logit_kernel(tgt_ref, nbr_ref, usr_ref, wn_ref, wa_ref, logit_ref):
    """Last hop fused with logit = sigmoid(sum(users * [head, head], dim=1))."""
    head = _attention_head(tgt_ref[...], nbr_ref[...], wn_ref[...], wa_ref[...])
    usr = usr_ref[...].astype(jnp.float32)                                # folded users [TB, D2]
    uv = jnp.sum(usr * head, axis=-1)                                     # [TB]
    logit_ref[...] = jax.nn.sigmoid(uv)[None, :]                          # [1, TB] lane-dense


# ---------------------------------------------------------------------------
# Tiling helpers (VMEM-budget driven)
# ---------------------------------------------------------------------------
def _round_up(x, m):
    return -(-x // m) * m


def _padded_lane_bytes(d, itemsize=2):
    """VMEM bytes of one row with lane padding to 128 (bf16 by default)."""
    return _round_up(d, LANE) * itemsize


def _choose_tile(n_rows, bytes_per_row, *, align, min_steps=2):
    """Pick a batch tile from a VMEM byte budget; prefer >=2 grid steps (v7x 2 TCs)."""
    rows_aligned = _round_up(n_rows, align)
    cap = max(align, (VMEM_BUDGET // max(bytes_per_row, 1)) // align * align)
    steps = -(-rows_aligned // cap)
    if rows_aligned >= min_steps * align:
        steps = max(steps, min_steps)
    tb = _round_up(-(-rows_aligned // steps), align)
    rows_padded = _round_up(n_rows, tb)
    return tb, rows_padded


def _pad_axis(x, axis, size):
    pad = size - x.shape[axis]
    if pad <= 0:
        return x
    widths = [(0, 0)] * x.ndim
    widths[axis] = (0, pad)
    return jnp.pad(x, widths)


# ---------------------------------------------------------------------------
# Pallas wrappers
# ---------------------------------------------------------------------------
def gat_aggregate(target_embs, neighbor_embs, wn, wa_row):
    """One aggregation hop. target_embs [M, Dt], neighbor_embs [N, M, Dn] (neighbor-major),
    wn [Dn, D2+1], wa_row [1, Dt]. Returns agg [M, D2] bf16 (single stored head)."""
    M, Dt = target_embs.shape
    N, _, Dn = neighbor_embs.shape
    D2 = wn.shape[1] - 1

    bytes_per_row = 2 * (_padded_lane_bytes(Dt) + N * _padded_lane_bytes(Dn)
                         + _padded_lane_bytes(D2))          # double-buffered blocks
    TB, Mp = _choose_tile(M, bytes_per_row, align=BF16_SUBLANE)

    tgt = _pad_axis(target_embs.astype(jnp.bfloat16), 0, Mp)
    nbr = _pad_axis(neighbor_embs.astype(jnp.bfloat16), 1, Mp)

    out = pl.pallas_call(
        _gat_agg_kernel,
        out_shape=jax.ShapeDtypeStruct((Mp, D2), jnp.bfloat16),
        grid_spec=pltpu.PrefetchScalarGridSpec(
            num_scalar_prefetch=0,
            grid=(Mp // TB,),
            in_specs=[
                pl.BlockSpec((TB, Dt), lambda i: (i, 0)),
                pl.BlockSpec((N, TB, Dn), lambda i: (0, i, 0)),
                pl.BlockSpec((Dn, D2 + 1), lambda i: (0, 0)),   # replicated weights
                pl.BlockSpec((1, Dt), lambda i: (0, 0)),        # replicated attn row
            ],
            out_specs=pl.BlockSpec((TB, D2), lambda i: (i, 0)),
        ),
        compiler_params=pltpu.CompilerParams(
            dimension_semantics=("parallel",),
            vmem_limit_bytes=VMEM_LIMIT),
    )(tgt, nbr, wn.astype(jnp.bfloat16), wa_row.astype(jnp.bfloat16))
    return out[:M]


def gat_aggregate_logit(target_embs, neighbor_embs, users_folded, wn, wa_row):
    """Final hop fused with the user·item dot + sigmoid. Returns [B] f32 logits."""
    B, Dt = target_embs.shape
    N, _, Dn = neighbor_embs.shape
    D2 = wn.shape[1] - 1

    bytes_per_row = 2 * (_padded_lane_bytes(Dt) + N * _padded_lane_bytes(Dn)
                         + _padded_lane_bytes(D2) + 4)
    # batch padded to a multiple of 128 -> logit block (1, TB) is always an unmasked
    # lane-dense store and the grid can split across TCs for large B.
    TB, Bp = _choose_tile(B, bytes_per_row, align=LANE)

    tgt = _pad_axis(target_embs.astype(jnp.bfloat16), 0, Bp)
    nbr = _pad_axis(neighbor_embs.astype(jnp.bfloat16), 1, Bp)
    usr = _pad_axis(users_folded.astype(jnp.bfloat16), 0, Bp)

    out = pl.pallas_call(
        _gat_agg_logit_kernel,
        out_shape=jax.ShapeDtypeStruct((1, Bp), jnp.float32),
        grid_spec=pltpu.PrefetchScalarGridSpec(
            num_scalar_prefetch=0,
            grid=(Bp // TB,),
            in_specs=[
                pl.BlockSpec((TB, Dt), lambda i: (i, 0)),
                pl.BlockSpec((N, TB, Dn), lambda i: (0, i, 0)),
                pl.BlockSpec((TB, D2), lambda i: (i, 0)),
                pl.BlockSpec((Dn, D2 + 1), lambda i: (0, 0)),   # replicated weights
                pl.BlockSpec((1, Dt), lambda i: (0, 0)),        # replicated attn row
            ],
            out_specs=pl.BlockSpec((1, TB), lambda i: (0, i)),  # lane-dense logits
        ),
        compiler_params=pltpu.CompilerParams(
            dimension_semantics=("parallel",),
            vmem_limit_bytes=VMEM_LIMIT),
    )(tgt, nbr, usr, wn.astype(jnp.bfloat16), wa_row.astype(jnp.bfloat16))
    return out[0, :B]


# ---------------------------------------------------------------------------
# Plain-JAX glue (embedding gather with max_norm, weight folding, hop loop)
# ---------------------------------------------------------------------------
def embedding_lookup_maxnorm(table, idx, max_norm=1.0):
    """nn.Embedding(..., max_norm=1): rows with ||e||_2 > 1 rescaled to norm 1.

    TODO(synk): PyTorch renormalizes the stored rows in place; this is the
    inference-equivalent per-lookup renorm only.
    """
    e = table[idx]
    n = jnp.linalg.norm(e, axis=-1, keepdims=True)
    scale = jnp.where(n > max_norm, max_norm / (n + 1e-7), 1.0)
    return e * scale


def _prep_weights(wt, a_row):
    """Fold W / a into per-hop matmul operands (exact algebraic refactors, f32 host math).

    wt [D, D2] (== W.T), a_row [1, D] (== a weight).
      wa_row [1, D]     : e_target = tgt @ wa_row^T        (== (tgt @ wt) @ a_t^T)
      wn0    [D,  D2+1] : [wt      | wt @ a_n^T]           hop-0 neighbors (entity dim D)
      wn1    [D2, D2+1] : [wt_fold | wt_fold @ a_n^T]      hop>0 neighbors (agg dim D2)
                          wt_fold = wt[:D2] + wt[D2:] folds the duplicated head halves.
    """
    D, D2 = wt.shape
    a_t = a_row[:, :D2]                                           # [1, D2]
    a_n = a_row[:, D2:]                                           # [1, D2]
    wa_row = a_t @ wt.T                                           # [1, D]
    wn0 = jnp.concatenate([wt, wt @ a_n.T], axis=1)               # [D, D2+1]
    wt_fold = wt[:D2] + wt[D2:]                                   # [D2, D2]
    wn1 = jnp.concatenate([wt_fold, wt_fold @ a_n.T], axis=1)     # [D2, D2+1]
    return wa_row, wn0, wn1


def forward(params, u, adj_lists):
    """GAT4Rec.forward: gnnForward over hops, last hop fused with dot+sigmoid."""
    users = embedding_lookup_maxnorm(params['users'], u)           # [B, D]
    D2 = users.shape[1] // 2
    users_folded = users[:, :D2] + users[:, D2:]                   # sum(u*[h,h]) == sum((u1+u2)*h)
    wa_row, wn0, wn1 = _prep_weights(params['wt'], params['a'])

    agg = None
    n_hops = len(adj_lists)
    for hop, (target_ids, neighbor_idx) in enumerate(adj_lists):
        target_embs = embedding_lookup_maxnorm(params['entitys'], target_ids)
        if hop == 0:
            # gather directly in neighbor-major [N, M, D] order (no extra transpose pass)
            # TODO(synk): an in-kernel scalar-prefetch gather of the entity table would
            # remove this materialized neighbor tensor entirely for large N*D.
            neighbor_embs = embedding_lookup_maxnorm(params['entitys'], neighbor_idx.T)
            wn = wn0
        else:
            # __getEmbeddingByNeibourIndex: ids already remapped to rows of the previous
            # hop's aggregated embeddings (single stored head, duplication folded in wn1).
            # TODO(synk): the pandas neighbourIndexs bookkeeping / remap gather stays in XLA.
            neighbor_embs = agg[neighbor_idx.T]                    # [N, M, D2]
            wn = wn1
        if hop == n_hops - 1:
            return gat_aggregate_logit(target_embs, neighbor_embs, users_folded,
                                       wn, wa_row)                 # [B]
        agg = gat_aggregate(target_embs, neighbor_embs, wn, wa_row)  # [M, D2]
    return agg


def init_params(key, n_users, n_entitys, dim):
    assert dim % 2 == 0
    d2 = dim // 2
    k1, k2, k3, k4 = jax.random.split(key, 4)
    bound = 1.0 / jnp.sqrt(jnp.float32(dim))
    return dict(
        entitys=jax.random.normal(k1, (n_entitys, dim), jnp.float32),  # nn.Embedding ~ N(0,1)
        users=jax.random.normal(k2, (n_users, dim), jnp.float32),
        wt=jax.random.uniform(k3, (dim, d2), jnp.float32, -bound, bound),  # W.T (Linear dim->dim//2)
        a=jax.random.uniform(k4, (1, dim), jnp.float32, -bound, bound),    # a weight (Linear dim->1)
    )


# ---------------------------------------------------------------------------
if __name__ == "__main__":
    n_users, n_entitys, dim = 20, 50, 32
    M, K0 = 16, 4     # hop-0: 16 first-hop nodes, 4 sampled neighbours each
    B, K1 = 8, 4      # hop-1: batch of 8 target items, 4 sampled neighbours each

    key = jax.random.PRNGKey(0)
    kp, ka, kb, kc, kd = jax.random.split(key, 5)
    params = init_params(kp, n_users, n_entitys, dim)

    hop0_targets = jax.random.randint(ka, (M,), 0, n_entitys, dtype=jnp.int32)
    hop0_neighbors = jax.random.randint(kb, (M, K0), 0, n_entitys, dtype=jnp.int32)
    hop1_targets = jax.random.randint(kc, (B,), 0, n_entitys, dtype=jnp.int32)
    # already remapped to rows of the hop-0 aggregated embeddings (neighbourIndexs table)
    hop1_neighbor_pos = jax.random.randint(kd, (B, K1), 0, M, dtype=jnp.int32)
    u = (jnp.arange(B, dtype=jnp.int32) * 3) % n_users

    adj_lists = [(hop0_targets, hop0_neighbors), (hop1_targets, hop1_neighbor_pos)]

    logit = forward(params, u, adj_lists)
    jax.block_until_ready(logit)
    assert logit.shape == (B,) and logit.dtype == jnp.float32
    print("KERNEL_OK")
</pallas_src>

<mosaic_0001>
module attributes {stable_mosaic.version = 11 : i64} {
  func.func @_gat_agg_kernel(%arg0: i32, %arg1: memref<16x32xbf16, #tpu.memory_space<vmem>>, %arg2: memref<4x16x32xbf16, #tpu.memory_space<vmem>>, %arg3: memref<32x17xbf16, #tpu.memory_space<vmem>>, %arg4: memref<1x32xbf16, #tpu.memory_space<vmem>>, %arg5: memref<16x16xbf16, #tpu.memory_space<vmem>>) attributes {dimension_semantics = [#tpu.dimension_semantics<parallel>], iteration_bounds = array<i64: 1>, scalar_prefetch = 0 : i64, scratch_operands = 0 : i64, tpu.core_type = #tpu.core_type<tc>, window_params = [{transform_indices = @transform_0, window_bounds = array<i64: 16, 32>}, {transform_indices = @transform_1, window_bounds = array<i64: 4, 16, 32>}, {pipeline_mode = #tpu.pipeline_mode<synchronous>, transform_indices = @transform_2, window_bounds = array<i64: 32, 17>}, {pipeline_mode = #tpu.pipeline_mode<synchronous>, transform_indices = @transform_3, window_bounds = array<i64: 1, 32>}, {transform_indices = @transform_4, window_bounds = array<i64: 16, 16>}]} {
    %c0 = arith.constant 0 : index
    %c0_0 = arith.constant 0 : index
    %0 = vector.load %arg1[%c0, %c0_0] : memref<16x32xbf16, #tpu.memory_space<vmem>>, vector<16x32xbf16>
    %c0_1 = arith.constant 0 : index
    %c0_2 = arith.constant 0 : index
    %c0_3 = arith.constant 0 : index
    %1 = vector.load %arg2[%c0_1, %c0_2, %c0_3] : memref<4x16x32xbf16, #tpu.memory_space<vmem>>, vector<4x16x32xbf16>
    %c0_4 = arith.constant 0 : index
    %c0_5 = arith.constant 0 : index
    %2 = vector.load %arg3[%c0_4, %c0_5] : memref<32x17xbf16, #tpu.memory_space<vmem>>, vector<32x17xbf16>
    %c0_6 = arith.constant 0 : index
    %c0_7 = arith.constant 0 : index
    %3 = vector.load %arg4[%c0_6, %c0_7] : memref<1x32xbf16, #tpu.memory_space<vmem>>, vector<1x32xbf16>
    %4 = arith.extf %0 : vector<16x32xbf16> to vector<16x32xf32>
    %5 = arith.extf %3 : vector<1x32xbf16> to vector<1x32xf32>
    %6 = vector.broadcast %5 : vector<1x32xf32> to vector<16x32xf32>
    %7 = arith.mulf %4, %6 : vector<16x32xf32>
    %cst = arith.constant dense<0.000000e+00> : vector<16xf32>
    %8 = vector.multi_reduction <add>, %7, %cst [1] : vector<16x32xf32> to vector<16xf32>
    %9 = vector.shape_cast %8 : vector<16xf32> to vector<16x1xf32>
    %10 = vector.shape_cast %1 : vector<4x16x32xbf16> to vector<64x32xbf16>
    %cst_8 = arith.constant dense<0.000000e+00> : vector<64x17xf32>
    %11 = tpu.matmul %10, %2, %cst_8 {dimension_numbers = #tpu.dot_dimension_numbers<[1], [0], [0], [1], [0, 0, 1, 1], [], []>} : vector<64x32xbf16>, vector<32x17xbf16>, vector<64x17xf32> -> vector<64x17xf32>
    %12 = vector.extract_strided_slice %11 {offsets = [0, 0], sizes = [16, 17], strides = [1, 1]} : vector<64x17xf32> to vector<16x17xf32>
    %13 = vector.extract_strided_slice %12 {offsets = [0, 0], sizes = [16, 16], strides = [1, 1]} : vector<16x17xf32> to vector<16x16xf32>
    %14 = vector.extract_strided_slice %12 {offsets = [0, 16], sizes = [16, 1], strides = [1, 1]} : vector<16x17xf32> to vector<16x1xf32>
    %15 = arith.addf %14, %9 : vector<16x1xf32>
    %cst_9 = arith.constant 0.000000e+00 : f32
    %16 = vector.broadcast %cst_9 : f32 to vector<16x1xf32>
    %17 = arith.cmpf oge, %15, %16 : vector<16x1xf32>
    %cst_10 = arith.constant 2.000000e-01 : f32
    %18 = vector.broadcast %cst_10 : f32 to vector<16x1xf32>
    %19 = arith.mulf %18, %15 : vector<16x1xf32>
    %20 = arith.select %17, %15, %19 : vector<16x1xi1>, vector<16x1xf32>
    %21 = vector.extract_strided_slice %11 {offsets = [16, 0], sizes = [16, 17], strides = [1, 1]} : vector<64x17xf32> to vector<16x17xf32>
    %22 = vector.extract_strided_slice %21 {offsets = [0, 0], sizes = [16, 16], strides = [1, 1]} : vector<16x17xf32> to vector<16x16xf32>
    %23 = vector.extract_strided_slice %21 {offsets = [0, 16], sizes = [16, 1], strides = [1, 1]} : vector<16x17xf32> to vector<16x1xf32>
    %24 = arith.addf %23, %9 : vector<16x1xf32>
    %cst_11 = arith.constant 0.000000e+00 : f32
    %25 = vector.broadcast %cst_11 : f32 to vector<16x1xf32>
    %26 = arith.cmpf oge, %24, %25 : vector<16x1xf32>
    %cst_12 = arith.constant 2.000000e-01 : f32
    %27 = vector.broadcast %cst_12 : f32 to vector<16x1xf32>
    %28 = arith.mulf %27, %24 : vector<16x1xf32>
    %29 = arith.select %26, %24, %28 : vector<16x1xi1>, vector<16x1xf32>
    %30 = vector.extract_strided_slice %11 {offsets = [32, 0], sizes = [16, 17], strides = [1, 1]} : vector<64x17xf32> to vector<16x17xf32>
    %31 = vector.extract_strided_slice %30 {offsets = [0, 0], sizes = [16, 16], strides = [1, 1]} : vector<16x17xf32> to vector<16x16xf32>
    %32 = vector.extract_strided_slice %30 {offsets = [0, 16], sizes = [16, 1], strides = [1, 1]} : vector<16x17xf32> to vector<16x1xf32>
    %33 = arith.addf %32, %9 : vector<16x1xf32>
    %cst_13 = arith.constant 0.000000e+00 : f32
    %34 = vector.broadcast %cst_13 : f32 to vector<16x1xf32>
    %35 = arith.cmpf oge, %33, %34 : vector<16x1xf32>
    %cst_14 = arith.constant 2.000000e-01 : f32
    %36 = vector.broadcast %cst_14 : f32 to vector<16x1xf32>
    %37 = arith.mulf %36, %33 : vector<16x1xf32>
    %38 = arith.select %35, %33, %37 : vector<16x1xi1>, vector<16x1xf32>
    %39 = vector.extract_strided_slice %11 {offsets = [48, 0], sizes = [16, 17], strides = [1, 1]} : vector<64x17xf32> to vector<16x17xf32>
    %40 = vector.extract_strided_slice %39 {offsets = [0, 0], sizes = [16, 16], strides = [1, 1]} : vector<16x17xf32> to vector<16x16xf32>
    %41 = vector.extract_strided_slice %39 {offsets = [0, 16], sizes = [16, 1], strides = [1, 1]} : vector<16x17xf32> to vector<16x1xf32>
    %42 = arith.addf %41, %9 : vector<16x1xf32>
    %cst_15 = arith.constant 0.000000e+00 : f32
    %43 = vector.broadcast %cst_15 : f32 to vector<16x1xf32>
    %44 = arith.cmpf oge, %42, %43 : vector<16x1xf32>
    %cst_16 = arith.constant 2.000000e-01 : f32
    %45 = vector.broadcast %cst_16 : f32 to vector<16x1xf32>
    %46 = arith.mulf %45, %42 : vector<16x1xf32>
    %47 = arith.select %44, %42, %46 : vector<16x1xi1>, vector<16x1xf32>
    %48 = arith.maximumf %20, %29 : vector<16x1xf32>
    %49 = arith.maximumf %48, %38 : vector<16x1xf32>
    %50 = arith.maximumf %49, %47 : vector<16x1xf32>
    %51 = arith.subf %20, %50 : vector<16x1xf32>
    %52 = math.exp %51 : vector<16x1xf32>
    %53 = arith.subf %29, %50 : vector<16x1xf32>
    %54 = math.exp %53 : vector<16x1xf32>
    %55 = arith.subf %38, %50 : vector<16x1xf32>
    %56 = math.exp %55 : vector<16x1xf32>
    %57 = arith.subf %47, %50 : vector<16x1xf32>
    %58 = math.exp %57 : vector<16x1xf32>
    %59 = arith.addf %52, %54 : vector<16x1xf32>
    %60 = arith.addf %59, %56 : vector<16x1xf32>
    %61 = arith.addf %60, %58 : vector<16x1xf32>
    %62 = vector.broadcast %52 : vector<16x1xf32> to vector<16x16xf32>
    %63 = arith.mulf %62, %13 : vector<16x16xf32>
    %64 = vector.broadcast %54 : vector<16x1xf32> to vector<16x16xf32>
    %65 = arith.mulf %64, %22 : vector<16x16xf32>
    %66 = arith.addf %63, %65 : vector<16x16xf32>
    %67 = vector.broadcast %56 : vector<16x1xf32> to vector<16x16xf32>
    %68 = arith.mulf %67, %31 : vector<16x16xf32>
    %69 = arith.addf %66, %68 : vector<16x16xf32>
    %70 = vector.broadcast %58 : vector<16x1xf32> to vector<16x16xf32>
    %71 = arith.mulf %70, %40 : vector<16x16xf32>
    %72 = arith.addf %69, %71 : vector<16x16xf32>
    %73 = tpu.reciprocal %61 {approx = true} : vector<16x1xf32> -> vector<16x1xf32>
    %74 = vector.broadcast %73 : vector<16x1xf32> to vector<16x16xf32>
    %75 = arith.mulf %72, %74 : vector<16x16xf32>
    %76 = arith.truncf %75 : vector<16x16xf32> to vector<16x16xbf16>
    %c0_17 = arith.constant 0 : index
    %c0_18 = arith.constant 0 : index
    %77 = vector.load %arg5[%c0_17, %c0_18] : memref<16x16xbf16, #tpu.memory_space<vmem>>, vector<16x16xbf16>
    tpu.vector_store %arg5[%c0_17, %c0_18], %76 {strides = array<i32>} : memref<16x16xbf16, #tpu.memory_space<vmem>>, vector<16x16xbf16>,
    return
  }
  func.func @transform_0(%arg0: i32) -> (i32, i32) {
    %c0_i32 = arith.constant 0 : i32
    %c0_i32_0 = arith.constant 0 : i32
    return %arg0, %c0_i32 : i32, i32
  }
  func.func @transform_1(%arg0: i32) -> (i32, i32, i32) {
    %c0_i32 = arith.constant 0 : i32
    %c0_i32_0 = arith.constant 0 : i32
    %c0_i32_1 = arith.constant 0 : i32
    return %c0_i32, %arg0, %c0_i32_0 : i32, i32, i32
  }
  func.func @transform_2(%arg0: i32) -> (i32, i32) {
    %c0_i32 = arith.constant 0 : i32
    %c0_i32_0 = arith.constant 0 : i32
    %c0_i32_1 = arith.constant 0 : i32
    return %c0_i32, %c0_i32_0 : i32, i32
  }
  func.func @transform_3(%arg0: i32) -> (i32, i32) {
    %c0_i32 = arith.constant 0 : i32
    %c0_i32_0 = arith.constant 0 : i32
    %c0_i32_1 = arith.constant 0 : i32
    return %c0_i32, %c0_i32_0 : i32, i32
  }
  func.func @transform_4(%arg0: i32) -> (i32, i32) {
    %c0_i32 = arith.constant 0 : i32
    %c0_i32_0 = arith.constant 0 : i32
    return %arg0, %c0_i32 : i32, i32
  }
}

</mosaic_0001>

<bundles_post_ra>
// kernel: tpu_custom_call.1
= control target key start
LH: loop header
LB: loop body
LE: loop exit
PB: predicated region body
PF: predicated region fallthrough
CT: control target
= control target key end

     0   :  { %9 = vsyncpa [#allocation3], 0  ;;  %s546_s0 = inlined_call_operand.vmem [shape: bf16[16,32], index: 0, kind: input, shape index: {}]   ;;  %s547_s1 = inlined_call_operand.hbm [shape: bf16[4,16,32], index: 1, kind: input, shape index: {}]   ;;  %s548_s2 = inlined_call_operand.vmem [shape: bf16[32,17], index: 2, kind: input, shape index: {}]   ;;  %s549_s3 = inlined_call_operand.vmem [shape: bf16[1,32], index: 3, kind: input, shape index: {}]   ;;  %s550_s4 = inlined_call_operand.hbm [shape: bf16[16,16], index: 4, kind: output, shape index: {}]  }
   0x1   :  { %10 = vsyncpa [#allocation4], 0  ;;  %s454_s15 = smov [#allocation2]  }
   0x2   :  { %s18_s16 = sshll.u32 %s454_s15, 4  ;;  %s19_s16 = int_to_ptr.vmem [resolvable:$true] %s18_s16 }
   0x3   :  { %s418_s17 = scalar_lea.vmem %s19_s16, 512  ;;  %p423_p1 = scmp.lt.s32.totalorder %s19_s16, %s19_s16 }
   0x4   :  { %p419_p0 = scmp.ne.s32.totalorder %s19_s16, %s418_s17  ;;  %p424_p2 = scmp.lt.s32.totalorder %s418_s17, %s418_s17 }
   0x6   :  { %p425_p3 = por %p424_p2, %p423_p1 }
   0x8   :  { %p426_p4 = pnand %p425_p3, %p419_p0 }
   0xa   :  { %429 = shalt.err (!%p426_p4)
}
   0xb   :  { %s455_s18 = smov 64   ;;  %s456_s19 = smov 4  }
   0xc   :  { %24 = dma.hbm_to_vmem [thread:$0]  %s547_s1, 512, %s19_s16, [#allocation3], %s455_s18, %s455_s18, %s456_s19  }
   0xd   :  { %450 = dma.done.wait [#allocation3], 512  }
   0xe   :  { %451 = vsyncadd [#allocation3], 4294966784  ;;  %v51_v0 = vlaneseq  ;;  %v384_v1 = vld [vmem:[%s548_s2 + $0x8] sm:$0xff]   ;;  %v385_v2 = vld [vmem:[%s548_s2] sm:$0xff]   ;;  %vm57_vm0 = vcmask 261120   ;;  %v457_v19 = vmov 16  }
   0xf   :  { %361 = vmatprep.subr.bf16.mxu0 %v384_v1  ;;  %373 = vmatprep.subr.bf16.mxu1 %v384_v1  ;;  %v386_v4 = vld [vmem:[#allocation2] sm:$0xff]   ;;  %v387_v5 = vld [vmem:[#allocation2 + $0x10] sm:$0xff]   ;;  %v388_v6 = vld [vmem:[#allocation2 + $0x8] sm:$0xff]   ;;  %vm317_vm9 = vcmask 125952  }
  0x10   :  { %v52_v3 = vshrl.u32 %v51_v0, 7  ;;  %362 = vmatpush3.bf16.msra.mxu0 %v384_v1  ;;  %375 = vmatpush3.bf16.msra.mxu1 %v384_v1  ;;  %v389_v8 = vld [vmem:[#allocation2 + $0x18] sm:$0xff]   ;;  %v352_v9 = vld [vmem:[%s546_s0] sm:$0xff]   ;;  %s458_s0 = smov [#allocation5]  }
  0x11   :  { %363 = vmatprep.subr.bf16.mxu0 %v385_v2  ;;  %374 = vmatprep.subr.bf16.mxu1 %v385_v2  ;;  %v47_v10 = vld [vmem:[%s549_s3] sm:$0x1]  ;;  %v353_v11 = vunpack.c.l.bf16 %v352_v9  ;;  %v354_v13 = vunpack.c.h.bf16 %v352_v9  ;;  %s325_s3 = sshll.u32 %s458_s0, 4  ;;  %s326_s3 = int_to_ptr.vmem [resolvable:$true] %s325_s3 }
  0x12   :  { %365 = vmatprep.mubr.msk.bf16.mxu0 %vm57_vm0, %v386_v4  ;;  %369 = vmatprep.mubr.msk.bf16.mxu1 %vm57_vm0, %v387_v5  ;;  %v53_v7 = vsub.s32 0, %v52_v3  ;;  %v50_v12 = vunpack.c.l.bf16 %v47_v10  ;;  %s430_s28 = scalar_lea.vmem %s326_s3, 128  ;;  %p435_p6 = scmp.lt.s32.totalorder %s326_s3, %s326_s3 }
  0x13   :  { %383 = vset.pattern.permute.xlu0 %v457_v19  ;;  %382 = vset.pattern.permute.xlu1 %v457_v19  ;;  %p431_p5 = scmp.ne.s32.totalorder %s326_s3, %s430_s28  ;;  %p436_p7 = scmp.lt.s32.totalorder %s430_s28, %s430_s28 }
  0x14   :  { %364 = vmatpush3.bf16.msra.mxu0 %v385_v2  ;;  %376 = vmatpush3.bf16.msra.mxu1 %v385_v2  ;;  %v54_v14 = vrot.slane %v50_v12, %v53_v7 }
  0x15   :  { %p437_p8 = por %p436_p7, %p435_p6 }
  0x16   :  { %v55_v15 = vmul.f32 %v353_v11, %v54_v14  ;;  %v56_v16 = vmul.f32 %v354_v13, %v54_v14 }
  0x17   :  { %366 = vmatmul.mubr.msk.bf16.vlgmr.msra.gmra.mxu0 %vm57_vm0, %v388_v6  ;;  %370 = vmatmul.mubr.msk.bf16.vlgmr.msra.gmra.mxu1 %vm57_vm0, %v389_v8  ;;  %p438_p9 = pnand %p437_p8, %p431_p5 }
  0x18   :  { %v58_v17 = vsel %vm57_vm0, %v55_v15, 0.0  ;;  %v61_v18 = vsel %vm57_vm0, %v56_v16, 0.0 }
  0x19   :  { %59 = vadd.xlane.f32.xlu0 %v58_v17 }
  0x1d   :  { %62 = vadd.xlane.f32.xlu0 %v61_v18 }
  0xa2   :  { %v60_v20 = vpop.xlane.xlu0 %59 }
  0xa6   :  { %v63_v25 = vpop.xlane.xlu0 %62 }
  0xd7   :  { %v508_v21 = vpop.f32.mrf.mxu0  ;;  %v510_v22 = vpop.f32.mrf.mxu1 }
  0xd8   :  { %v181_v23 = vadd.f32 %v508_v21, %v60_v20  ;;  %v197_v24 = vadd.f32 %v510_v22, %v60_v20 }
  0xd9   :  { %v514_v26 = vpop.f32.mrf.mxu0  ;;  %v516_v27 = vpop.f32.mrf.mxu1 }
  0xda   :  { %v185_v28 = vmul.f32 0.2, %v181_v23  ;;  %vm183_vm1 = vcmp.ge.f32.partialorder %v181_v23, 0.0  ;;  %v173_v29 = vadd.f32 %v514_v26, %v60_v20  ;;  %v189_v30 = vadd.f32 %v516_v27, %v60_v20 }
  0xdb   :  { %v520_v31 = vpop.f32.mrf.mxu0  ;;  %v522_v32 = vpop.f32.mrf.mxu1  ;;  %v201_v33 = vmul.f32 0.2, %v197_v24  ;;  %vm199_vm5 = vcmp.ge.f32.partialorder %v197_v24, 0.0 }
  0xdc   :  { %v182_v34 = vadd.f32 %v520_v31, %v63_v25  ;;  %vm175_vm2 = vcmp.ge.f32.partialorder %v173_v29, 0.0  ;;  %v177_v35 = vmul.f32 0.2, %v173_v29  ;;  %v193_v36 = vmul.f32 0.2, %v189_v30 }
  0xdd   :  { %v525_v37 = vpop.f32.mrf.mxu0  ;;  %v527_v38 = vpop.f32.mrf.mxu1  ;;  %v187_v39 = vsel %vm183_vm1, %v181_v23, %v185_v28  ;;  %vm191_vm3 = vcmp.ge.f32.partialorder %v189_v30, 0.0  ;;  %v198_v43 = vadd.f32 %v522_v32, %v63_v25  ;;  %v203_v52 = vsel %vm199_vm5, %v197_v24, %v201_v33 }
  0xde   :  { %v186_v40 = vmul.f32 0.2, %v182_v34  ;;  %v174_v41 = vadd.f32 %v525_v37, %v63_v25  ;;  %v179_v42 = vsel %vm175_vm2, %v173_v29, %v177_v35  ;;  %vm184_vm4 = vcmp.ge.f32.partialorder %v182_v34, 0.0 }
  0xdf   :  { %v190_v44 = vadd.f32 %v527_v38, %v63_v25  ;;  %v205_v45 = vmax.f32 %v179_v42, %v187_v39  ;;  %v195_v47 = vsel %vm191_vm3, %v189_v30, %v193_v36  ;;  %v202_v53 = vmul.f32 0.2, %v198_v43 }
  0xe0   :  { %vm176_vm6 = vcmp.ge.f32.partialorder %v174_v41, 0.0  ;;  %v178_v46 = vmul.f32 0.2, %v174_v41  ;;  %v188_v51 = vsel %vm184_vm4, %v182_v34, %v186_v40  ;;  %vm200_vm8 = vcmp.ge.f32.partialorder %v198_v43, 0.0 }
  0xe1   :  { %vm192_vm7 = vcmp.ge.f32.partialorder %v190_v44, 0.0  ;;  %v194_v48 = vmul.f32 0.2, %v190_v44  ;;  %v207_v49 = vmax.f32 %v205_v45, %v195_v47  ;;  %v204_v59 = vsel %vm200_vm8, %v198_v43, %v202_v53 }
  0xe2   :  { %v180_v50 = vsel %vm176_vm6, %v174_v41, %v178_v46 }
  0xe3   :  { %v206_v54 = vmax.f32 %v180_v50, %v188_v51  ;;  %v209_v55 = vmax.f32 %v207_v49, %v203_v52  ;;  %v196_v56 = vsel %vm192_vm7, %v190_v44, %v194_v48 }
  0xe5   :  { %v208_v57 = vmax.f32 %v206_v54, %v196_v56  ;;  %v217_v58 = vsub.f32 %v187_v39, %v209_v55  ;;  %v211_v62 = vsub.f32 %v179_v42, %v209_v55  ;;  %v223_v63 = vsub.f32 %v195_v47, %v209_v55 }
  0xe6   :  { %v229_v5 = vsub.f32 %v203_v52, %v209_v55 }
  0xe7   :  { %v219_v60 = vmul.f32 1.442695, %v217_v58  ;;  %v210_v61 = vmax.f32 %v208_v57, %v204_v59  ;;  %v213_v2 = vmul.f32 1.442695, %v211_v62  ;;  %v225_v3 = vmul.f32 1.442695, %v223_v63 }
  0xe8   :  { %v231_v8 = vmul.f32 1.442695, %v229_v5 }
  0xe9   :  { %390 = vpow2.f32 %v219_v60  ;;  %v212_v0 = vsub.f32 %v180_v50, %v210_v61  ;;  %v218_v1 = vsub.f32 %v188_v51, %v210_v61  ;;  %v224_v7 = vsub.f32 %v196_v56, %v210_v61 }
  0xea   :  { %392 = vpow2.f32 %v213_v2  ;;  %v230_v11 = vsub.f32 %v204_v59, %v210_v61 }
  0xeb   :  { %v215_v4 = vmul.f32 1.442695, %v212_v0  ;;  %v221_v6 = vmul.f32 1.442695, %v218_v1  ;;  %394 = vpow2.f32 %v225_v3  ;;  %v227_v10 = vmul.f32 1.442695, %v224_v7 }
  0xec   :  { %v233_v12 = vmul.f32 1.442695, %v230_v11 }
  0xed   :  { %396 = vpow2.f32 %v215_v4 }
  0xee   :  { %398 = vpow2.f32 %v221_v6 }
  0xef   :  { %400 = vpow2.f32 %v231_v8 }
  0xf0   :  { %402 = vpow2.f32 %v227_v10 }
  0xf1   :  { %404 = vpow2.f32 %v233_v12 }
  0xf6   :  { %v391_v9 = vpop.eup %390 }
  0xf7   :  { %255 = vperm.xlu0 %383, %v391_v9   ;;  %v393_v13 = vpop.eup %392 }
  0xf8   :  { %243 = vperm.xlu1 %382, %v393_v13   ;;  %v395_v14 = vpop.eup %394  ;;  %v235_v16 = vadd.f32 %v393_v13, %v391_v9 }
  0xfa   :  { %v397_v15 = vpop.eup %396  ;;  %v237_v19 = vadd.f32 %v395_v14, %v235_v16 }
  0xfb   :  { %v399_v17 = vpop.eup %398 }
  0xfc   :  { %269 = vperm.xlu1 %382, %v395_v14   ;;  %v236_v18 = vadd.f32 %v399_v17, %v397_v15  ;;  %v401_v20 = vpop.eup %400 }
  0xfd   :  { %v403_v23 = vpop.eup %402  ;;  %v239_v25 = vadd.f32 %v401_v20, %v237_v19 }
  0xfe   :  { %v238_v24 = vadd.f32 %v403_v23, %v236_v18  ;;  %v405_v28 = vpop.eup %404 }
  0xff   :  { %406 = vrcp.f32 %v239_v25 }
 0x100   :  { %283 = vperm.xlu1 %382, %v401_v20   ;;  %v240_v29 = vadd.f32 %v405_v28, %v238_v24 }
 0x102   :  { %408 = vrcp.f32 %v240_v29 }
 0x104   :  { %248 = vperm.xlu1 %382, %v397_v15  }
 0x108   :  { %260 = vperm.xlu1 %382, %v399_v17  }
 0x10c   :  { %274 = vperm.xlu1 %382, %v403_v23   ;;  %v407_v30 = vpop.eup %406 }
 0x10f   :  { %v409_v33 = vpop.eup %408 }
 0x110   :  { %288 = vperm.xlu1 %382, %v405_v28  }
 0x114   :  { %299 = vperm.xlu1 %382, %v407_v30  }
 0x118   :  { %304 = vperm.xlu1 %382, %v409_v33  }
 0x172   :  { %v256_v40 = vpop.permute.xlu0 %255 }
 0x173   :  { %v244_v34 = vpop.permute.xlu1 %243  ;;  %v263_v43 = vmul.f32 %v508_v21, %v256_v40 }
 0x174   :  { %v251_v42 = vmul.f32 %v244_v34, %v514_v26 }
 0x176   :  { %v265_v46 = vadd.f32 %v263_v43, %v251_v42 }
 0x177   :  { %v270_v35 = vpop.permute.xlu1 %269 }
 0x178   :  { %v277_v45 = vmul.f32 %v270_v35, %v516_v27 }
 0x17a   :  { %v279_v50 = vadd.f32 %v277_v45, %v265_v46 }
 0x17b   :  { %v284_v36 = vpop.permute.xlu1 %283 }
 0x17c   :  { %v291_v47 = vmul.f32 %v510_v22, %v284_v36 }
 0x17e   :  { %v293_v26 = vadd.f32 %v291_v47, %v279_v50 }
 0x17f   :  { %v249_v39 = vpop.permute.xlu1 %248 }
 0x180   :  { %v252_v51 = vmul.f32 %v249_v39, %v525_v37 }
 0x183   :  { %v261_v41 = vpop.permute.xlu1 %260 }
 0x184   :  { %v264_v48 = vmul.f32 %v520_v31, %v261_v41 }
 0x186   :  { %v266_v53 = vadd.f32 %v264_v48, %v252_v51 }
 0x187   :  { %v275_v44 = vpop.permute.xlu1 %274 }
 0x188   :  { %v278_v52 = vmul.f32 %v275_v44, %v527_v38 }
 0x18a   :  { %v280_v21 = vadd.f32 %v278_v52, %v266_v53 }
 0x18b   :  { %v289_v49 = vpop.permute.xlu1 %288 }
 0x18c   :  { %v292_v54 = vmul.f32 %v522_v32, %v289_v49 }
 0x18e   :  { %v294_v57 = vadd.f32 %v292_v54, %v280_v21 }
 0x18f   :  { %v300_v55 = vpop.permute.xlu1 %299 }
 0x190   :  { %v307_v56 = vmul.f32 %v300_v55, %v293_v26 }
 0x192   :  { %v349_v27 = vpack.c.bf16 %v307_v56, %v307_v56 }
 0x193   :  { %v305_v58 = vpop.permute.xlu1 %304 }
 0x194   :  { %v308_v22 = vmul.f32 %v305_v58, %v294_v57  ;;  %318 = vst.msk [vmem:[#allocation5] sm:$0xf] %vm317_vm9, %v349_v27 }
 0x196   :  { %v350_v31 = vpack.c.bf16 %v308_v22, %v308_v22 }
 0x198   :  { %319 = vst.msk [vmem:[#allocation5 + $0x4] sm:$0xf] %vm317_vm9, %v350_v31 }
 0x199   :  { %441 = shalt.err (!%p438_p9)
}
 0x19a   :  { %331 = dma.vmem_to_hbm [thread:$0]  %s326_s3, 128, %s550_s4, [#allocation4], %s455_s18, %s455_s18, %s456_s19  }
 0x19b   :  { %452 = dma.done.wait [#allocation4], 128  }
 0x19c   :  { %453 = vsyncadd [#allocation4], 4294967168 }
 0x19d   :  { %335 = vsyncpa [#allocation3], 1 }
 0x19e   :  { %336 = vsyncpa [#allocation4], 1 }

</bundles_post_ra>
